<compile_context>
chip_gen: v6e
topology: v6e:2x2x1
jax: 0.10.0
libtpu: 0.0.40
codegen_flags: <defaults>
</compile_context>

<pallas_src>
import numpy as np
import jax
import jax.numpy as jnp
from jax.experimental import pallas as pl
from jax.experimental.pallas import tpu as pltpu

try:  # prefer scipy's C solver if present (matches the reference exactly)
    from scipy.optimize import linear_sum_assignment as _scipy_lsa
except Exception:  # pragma: no cover - scipy optional
    _scipy_lsa = None


# -----------------------------------------------------------------------------
# Hardware / block-sizing helpers
# -----------------------------------------------------------------------------
def _round_up(x, m):
    return ((x + m - 1) // m) * m


def _padded_tile_bytes(sublane, lane, itemsize):
    """Bytes of one (sublane, lane) tile after TPU layout padding."""
    if itemsize >= 4:
        sub_mult = 8
    else:
        sub_mult = 8 * (4 // max(1, itemsize))     # bf16 -> 16, int8/fp8 -> 32
    return _round_up(sublane, sub_mult) * _round_up(lane, 128) * itemsize


def _tpu_generation_knobs():
    """Return (block_budget_bytes, vmem_limit_bytes, num_tensorcores)."""
    vmem_cap = None
    num_cores = None
    try:
        info = pltpu.get_tpu_info()
        cap = getattr(info, "vmem_capacity_bytes", None)
        if cap:
            vmem_cap = int(cap)
        for attr in ("num_tensorcores", "tensorcores_per_chip",
                     "core_count", "num_cores"):
            v = getattr(info, attr, None)
            if isinstance(v, int) and v > 0:
                num_cores = v
                break
    except Exception:
        pass
    if vmem_cap is None:
        try:
            kind = jax.devices()[0].device_kind.lower()
        except Exception:
            kind = ""
        vmem_cap = 64 * 1024 * 1024 if "v7" in kind else 128 * 1024 * 1024
    if num_cores is None:
        # v7x halves per-TC VMEM (64 MiB) and has 2 TCs; v5e/v6e: 128 MiB, 1 TC.
        num_cores = 2 if vmem_cap <= 64 * 1024 * 1024 else 1
    if vmem_cap <= 64 * 1024 * 1024:                       # v7x-class
        return 20 * 1024 * 1024, 48 * 1024 * 1024, num_cores
    return 40 * 1024 * 1024, 64 * 1024 * 1024, num_cores   # v5e / v6e


def _pick_batch_block(B, Q, C, G, in_itemsize, *, budget_bytes, num_cores):
    """Largest per-grid-step batch block whose double-buffered, layout-padded
    working set fits `budget_bytes`.  On 1-TC chips the whole batch goes into
    one grid step when it fits; on multi-TC chips (v7x) keep >= num_cores grid
    steps so every TensorCore gets work."""
    per_batch = (
        _padded_tile_bytes(G, 1, 4)                     # gt labels (G, 1) int32
        + _padded_tile_bytes(C, Q, in_itemsize)         # prob^T   (C, Q)
        + _padded_tile_bytes(1, Q, in_itemsize)         # objness  (1, Q)
        + 2 * _padded_tile_bytes(G, Q, in_itemsize)     # cd^T, giou^T (G, Q)
        + _padded_tile_bytes(G, Q, 4)                   # f32 output (G, Q)
    )
    max_bb = max(1, budget_bytes // (2 * per_batch))    # 2x: double buffering
    if num_cores >= 2 and B >= 2:
        bb = min(max_bb, pl.cdiv(B, num_cores))         # >= num_cores steps
    else:
        bb = min(max_bb, B)                             # single grid step
    return int(max(1, bb))


# -----------------------------------------------------------------------------
# Pallas kernel: transposed cost matrix
#   cost_T[b, g, q] = cost_class      * (-sem_cls_prob[b, q, gt_label[b, g]])
#                   + cost_objectness * (-objectness_prob[b, q])
#                   + cost_center     * ( center_dist[b, q, g])
#                   + cost_giou       * (-gious[b, q, g])
# -----------------------------------------------------------------------------
def _build_cost_fn(cost_class, cost_objectness, cost_giou, cost_center):
    cost_class = float(cost_class)
    neg_cost_objectness = -float(cost_objectness)
    cost_center = float(cost_center)
    neg_cost_giou = -float(cost_giou)

    budget_bytes, vmem_limit, num_cores = _tpu_generation_knobs()

    def kernel(labels_ref, probt_ref, obj_ref, cdt_ref, giout_ref, out_ref):
        # labels_ref: (Bb, G, 1) int32
        # probt_ref : (Bb, C, Q)     lane-dense: Q on lanes, C on sublanes
        # obj_ref   : (Bb, 1, Q)     lane-dense, sublane-broadcast
        # cdt_ref / giout_ref / out_ref: (Bb, G, Q)  (Q on lanes -> dense vst)
        Bb, G, _ = labels_ref.shape
        C = probt_ref.shape[1]
        in_dtype = probt_ref.dtype

        # Class gather expressed as a one-hot matmul on the MXU.
        # NOTE: padded / out-of-range gt labels produce an all-zero one-hot row
        # (class cost 0) instead of gathering a real probability; benign
        # because columns >= nactual_gt are never used by the assignment, but
        # the padding convention must not change silently.
        class_iota = jax.lax.broadcasted_iota(jnp.int32, (Bb, G, C), 2)
        hit = class_iota == labels_ref[...]                          # (Bb,G,C)
        if in_dtype == jnp.float32:
            # Fold weight + sign into the one-hot (exact in f32): removes a
            # full (Bb,G,Q) VPU multiply pass.
            onehot = jnp.where(hit, jnp.float32(-cost_class), jnp.float32(0.0))
            class_term = jnp.einsum("bgc,bcq->bgq", onehot, probt_ref[...],
                                    preferred_element_type=jnp.float32)
        else:
            # Narrow input dtype: apply the weight on the f32 result so a
            # non-bf16-representable weight does not change numerics.
            onehot = hit.astype(in_dtype)
            class_term = (-cost_class) * jnp.einsum(
                "bgc,bcq->bgq", onehot, probt_ref[...],
                preferred_element_type=jnp.float32)

        out_ref[...] = (class_term
                        + neg_cost_objectness * obj_ref[...].astype(jnp.float32)
                        + cost_center * cdt_ref[...].astype(jnp.float32)
                        + neg_cost_giou * giout_ref[...].astype(jnp.float32))

    def cost_fn(sem_cls_prob, objectness_prob, center_dist, gious, gt_labels,
                *, g_used):
        B, Q, C = sem_cls_prob.shape
        g_used = int(g_used)

        # Layout plumbing only: the transposes fuse into single XLA copies
        # producing lane-dense slabs; no standalone dtype-cast passes.
        labels3 = gt_labels[:, :g_used].astype(jnp.int32).reshape(B, g_used, 1)
        prob_t = jnp.swapaxes(sem_cls_prob, 1, 2)           # (B, C, Q)
        obj3 = objectness_prob.reshape(B, 1, Q)
        cd_t = jnp.swapaxes(center_dist[:, :, :g_used], 1, 2)
        giou_t = jnp.swapaxes(gious[:, :, :g_used], 1, 2)

        bb = _pick_batch_block(B, Q, C, g_used, sem_cls_prob.dtype.itemsize,
                               budget_bytes=budget_bytes, num_cores=num_cores)
        grid = (pl.cdiv(B, bb),)

        bytes_accessed = int(
            labels3.size * 4
            + prob_t.size * prob_t.dtype.itemsize
            + obj3.size * obj3.dtype.itemsize
            + cd_t.size * cd_t.dtype.itemsize
            + giou_t.size * giou_t.dtype.itemsize
            + B * g_used * Q * 4)
        cost_est = pl.CostEstimate(
            flops=int(2 * B * g_used * C * Q + 8 * B * g_used * Q),
            transcendentals=0,
            bytes_accessed=bytes_accessed)

        return pl.pallas_call(
            kernel,
            out_shape=jax.ShapeDtypeStruct((B, g_used, Q), jnp.float32),
            grid=grid,
            in_specs=[
                pl.BlockSpec((bb, g_used, 1), lambda i: (i, 0, 0)),
                pl.BlockSpec((bb, C, Q), lambda i: (i, 0, 0)),
                pl.BlockSpec((bb, 1, Q), lambda i: (i, 0, 0)),
                pl.BlockSpec((bb, g_used, Q), lambda i: (i, 0, 0)),
                pl.BlockSpec((bb, g_used, Q), lambda i: (i, 0, 0)),
            ],
            out_specs=pl.BlockSpec((bb, g_used, Q), lambda i: (i, 0, 0)),
            compiler_params=pltpu.CompilerParams(
                dimension_semantics=("parallel",),
                vmem_limit_bytes=vmem_limit),
            cost_estimate=cost_est,
        )(labels3, prob_t, obj3, cd_t, giou_t)

    return jax.jit(cost_fn, static_argnames=("g_used",))


# -----------------------------------------------------------------------------
# Host-side Hungarian solver (scipy when available, NumPy fallback)
# -----------------------------------------------------------------------------
def _linear_sum_assignment(cost):
    if _scipy_lsa is not None:
        rows, cols = _scipy_lsa(cost)
        return np.asarray(rows, dtype=np.int64), np.asarray(cols, dtype=np.int64)

    cost = np.asarray(cost, dtype=np.float64)
    transposed = cost.shape[0] > cost.shape[1]
    if transposed:
        cost = cost.T
    n, m = cost.shape  # n <= m : assign every row a distinct column
    u = np.zeros(n + 1)
    v = np.zeros(m + 1)
    p = np.zeros(m + 1, dtype=np.int64)
    way = np.zeros(m + 1, dtype=np.int64)
    for i in range(1, n + 1):
        p[0] = i
        j0 = 0
        minv = np.full(m + 1, np.inf)
        used = np.zeros(m + 1, dtype=bool)
        while True:
            used[j0] = True
            i0 = p[j0]
            delta = np.inf
            j1 = 0
            for j in range(1, m + 1):
                if not used[j]:
                    cur = cost[i0 - 1, j - 1] - u[i0] - v[j]
                    if cur < minv[j]:
                        minv[j] = cur
                        way[j] = j0
                    if minv[j] < delta:
                        delta = minv[j]
                        j1 = j
            for j in range(m + 1):
                if used[j]:
                    u[p[j]] += delta
                    v[j] -= delta
                else:
                    minv[j] -= delta
            j0 = j1
            if p[j0] == 0:
                break
        while True:
            j1 = way[j0]
            p[j0] = p[j1]
            j0 = j1
            if j0 == 0:
                break
    rows, cols = [], []
    for j in range(1, m + 1):
        if p[j] != 0:
            rows.append(p[j] - 1)
            cols.append(j - 1)
    rows = np.asarray(rows, dtype=np.int64)
    cols = np.asarray(cols, dtype=np.int64)
    if transposed:
        rows, cols = cols, rows
    order = np.argsort(rows)
    return rows[order], cols[order]


# -----------------------------------------------------------------------------
# Matcher module (JAX / Pallas)
# -----------------------------------------------------------------------------
class PallasMatcher:
    def __init__(self, cost_class, cost_objectness, cost_giou, cost_center):
        self.cost_class = cost_class
        self.cost_objectness = cost_objectness
        self.cost_giou = cost_giou
        self.cost_center = cost_center
        self._cost_fn = _build_cost_fn(cost_class, cost_objectness,
                                       cost_giou, cost_center)

    def __call__(self, outputs, data_dict):
        sem_cls_prob = jnp.asarray(outputs["sem_cls_prob"])
        objectness_prob = jnp.asarray(outputs["objectness_prob"])
        center_dist = jnp.asarray(outputs["center_dist"])
        gious = jnp.asarray(outputs["gious"])
        gt_labels = jnp.asarray(data_dict["gt_box_sem_cls_label"])
        nactual_gt = np.asarray(data_dict["nactual_gt"])

        B, Q, _ = sem_cls_prob.shape
        G = gt_labels.shape[1]

        # Only compute / transfer the gt columns that can actually be matched;
        # bucket to a multiple of 8 (16 for bf16 gt-shaped inputs, which pack
        # 16 sublanes per vreg) to keep recompilation bounded.
        bucket = 16 if center_dist.dtype == jnp.bfloat16 else 8
        max_gt = int(nactual_gt.max()) if nactual_gt.size > 0 else 0
        if max_gt > 0:
            g_used = min(G, max(bucket, _round_up(max_gt, bucket)))
        else:
            g_used = min(G, bucket)

        # --- Pallas hot path: transposed cost matrix (B, g_used, Q) ----------
        cost_t = self._cost_fn(sem_cls_prob, objectness_prob, center_dist,
                               gious, gt_labels, g_used=g_used)
        cost_t = np.asarray(jax.block_until_ready(cost_t))

        # --- host-side assignment (mirrors .cpu().numpy() + scipy path) ------
        # TODO(synk): linear_sum_assignment is sequential/host-side in the
        # reference implementation; no clean Pallas equivalent, kept on host.
        per_prop_gt_inds = np.zeros([B, Q], dtype=np.int64)
        proposal_matched_mask = np.zeros([B, Q], dtype=np.float32)
        assignments = []
        for b in range(B):
            assign = []
            n = int(nactual_gt[b])
            if n > 0:
                # cost_t[b, :n, :].T == reference final_cost[b, :, :n]
                rows, cols = _linear_sum_assignment(cost_t[b, :n, :].T)
                assign = [jnp.asarray(rows, dtype=jnp.int32),
                          jnp.asarray(cols, dtype=jnp.int32)]
                per_prop_gt_inds[b, rows] = cols
                proposal_matched_mask[b, rows] = 1.0
            assignments.append(assign)

        return {
            "assignments": assignments,
            # int32 (JAX default x64 disabled) standing in for torch's int64.
            "per_prop_gt_inds": jnp.asarray(per_prop_gt_inds, dtype=jnp.int32),
            "proposal_matched_mask": jnp.asarray(proposal_matched_mask,
                                                 dtype=jnp.float32),
            # reference-layout cost matrix (B, Q, g_used); numpy view, no copy
            "final_cost": np.swapaxes(cost_t, 1, 2),
        }


# -----------------------------------------------------------------------------
# Demo / self-check
# -----------------------------------------------------------------------------
if __name__ == "__main__":
    B, Q, G, C = 2, 128, 8, 32  # batch, nqueries, ngt (padded), num classes

    key = jax.random.PRNGKey(0)
    k1, k2, k3, k4, k5 = jax.random.split(key, 5)

    sem_cls_prob = jax.nn.softmax(
        jax.random.normal(k1, (B, Q, C), dtype=jnp.float32), axis=-1)
    objectness_prob = jax.nn.sigmoid(
        jax.random.normal(k2, (B, Q), dtype=jnp.float32))
    center_dist = jnp.abs(jax.random.normal(k3, (B, Q, G), dtype=jnp.float32))
    gious = jnp.tanh(jax.random.normal(k4, (B, Q, G), dtype=jnp.float32))
    gt_box_sem_cls_label = jax.random.randint(k5, (B, G), 0, C, dtype=jnp.int32)
    nactual_gt = jnp.array([6, 3], dtype=jnp.int32)

    outputs = {
        "sem_cls_prob": sem_cls_prob,
        "objectness_prob": objectness_prob,
        "center_dist": center_dist,
        "gious": gious,
    }
    data_dict = {
        "gt_box_sem_cls_label": gt_box_sem_cls_label,
        "nactual_gt": nactual_gt,
    }

    matcher = PallasMatcher(cost_class=1.0, cost_objectness=2.0,
                            cost_giou=3.0, cost_center=0.5)
    result = matcher(outputs, data_dict)
    jax.block_until_ready(result["per_prop_gt_inds"])
    jax.block_until_ready(result["proposal_matched_mask"])

    # Cross-check the Pallas cost matrix against a pure-JAX reference.
    g_used = result["final_cost"].shape[-1]
    gathered = jnp.take_along_axis(
        sem_cls_prob,
        jnp.broadcast_to(gt_box_sem_cls_label[:, None, :], (B, Q, G)),
        axis=2)
    ref_cost = (1.0 * (-gathered)
                + 2.0 * (-objectness_prob[..., None])
                + 0.5 * center_dist
                + 3.0 * (-gious))
    np.testing.assert_allclose(result["final_cost"],
                               np.asarray(ref_cost)[:, :, :g_used],
                               rtol=1e-5, atol=1e-5)

    # Matched-proposal counts must equal nactual_gt.
    np.testing.assert_allclose(
        np.asarray(result["proposal_matched_mask"]).sum(axis=1),
        np.asarray(nactual_gt, dtype=np.float32))

    print("KERNEL_OK")
</pallas_src>

<mosaic_0001>
module attributes {stable_mosaic.version = 11 : i64} {
  func.func @kernel(%arg0: i32, %arg1: memref<2x8x1xi32, #tpu.memory_space<vmem>>, %arg2: memref<2x32x128xf32, #tpu.memory_space<vmem>>, %arg3: memref<2x1x128xf32, #tpu.memory_space<vmem>>, %arg4: memref<2x8x128xf32, #tpu.memory_space<vmem>>, %arg5: memref<2x8x128xf32, #tpu.memory_space<vmem>>, %arg6: memref<2x8x128xf32, #tpu.memory_space<vmem>>) attributes {dimension_semantics = [#tpu.dimension_semantics<parallel>], iteration_bounds = array<i64: 1>, scalar_prefetch = 0 : i64, scratch_operands = 0 : i64, tpu.core_type = #tpu.core_type<tc>, window_params = [{transform_indices = @transform_0, window_bounds = array<i64: 2, 8, 1>}, {transform_indices = @transform_1, window_bounds = array<i64: 2, 32, 128>}, {transform_indices = @transform_2, window_bounds = array<i64: 2, 1, 128>}, {transform_indices = @transform_3, window_bounds = array<i64: 2, 8, 128>}, {transform_indices = @transform_4, window_bounds = array<i64: 2, 8, 128>}, {transform_indices = @transform_5, window_bounds = array<i64: 2, 8, 128>}]} {
    %0 = tpu.iota {dimensions = array<i32: 2>} : vector<2x8x32xi32>
    %c0 = arith.constant 0 : index
    %c0_0 = arith.constant 0 : index
    %c0_1 = arith.constant 0 : index
    %1 = vector.load %arg1[%c0, %c0_0, %c0_1] : memref<2x8x1xi32, #tpu.memory_space<vmem>>, vector<2x8x1xi32>
    %2 = vector.broadcast %1 : vector<2x8x1xi32> to vector<2x8x32xi32>
    %3 = arith.cmpi eq, %0, %2 : vector<2x8x32xi32>
    %cst = arith.constant -1.000000e+00 : f32
    %cst_2 = arith.constant 0.000000e+00 : f32
    %4 = vector.broadcast %cst : f32 to vector<2x8x32xf32>
    %5 = vector.broadcast %cst_2 : f32 to vector<2x8x32xf32>
    %6 = arith.select %3, %4, %5 : vector<2x8x32xi1>, vector<2x8x32xf32>
    %c0_3 = arith.constant 0 : index
    %c0_4 = arith.constant 0 : index
    %c0_5 = arith.constant 0 : index
    %7 = vector.load %arg2[%c0_3, %c0_4, %c0_5] : memref<2x32x128xf32, #tpu.memory_space<vmem>>, vector<2x32x128xf32>
    "tpu.trace_start"() <{level = 10 : i32, message = "bgc,bcq->bgq"}> : () -> ()
    %cst_6 = arith.constant dense<0.000000e+00> : vector<2x8x128xf32>
    %8 = tpu.matmul %6, %7, %cst_6 {dimension_numbers = #tpu.dot_dimension_numbers<[2], [1], [1], [2], [0, 0, 0, 1, 1, 2], [0], [0]>} : vector<2x8x32xf32>, vector<2x32x128xf32>, vector<2x8x128xf32> -> vector<2x8x128xf32>
    "tpu.trace_stop"() : () -> ()
    %c0_7 = arith.constant 0 : index
    %c0_8 = arith.constant 0 : index
    %c0_9 = arith.constant 0 : index
    %9 = vector.load %arg3[%c0_7, %c0_8, %c0_9] : memref<2x1x128xf32, #tpu.memory_space<vmem>>, vector<2x1x128xf32>
    %cst_10 = arith.constant -2.000000e+00 : f32
    %10 = vector.broadcast %cst_10 : f32 to vector<2x1x128xf32>
    %11 = arith.mulf %10, %9 : vector<2x1x128xf32>
    %12 = vector.broadcast %11 : vector<2x1x128xf32> to vector<2x8x128xf32>
    %13 = arith.addf %8, %12 : vector<2x8x128xf32>
    %c0_11 = arith.constant 0 : index
    %c0_12 = arith.constant 0 : index
    %c0_13 = arith.constant 0 : index
    %14 = vector.load %arg4[%c0_11, %c0_12, %c0_13] : memref<2x8x128xf32, #tpu.memory_space<vmem>>, vector<2x8x128xf32>
    %cst_14 = arith.constant 5.000000e-01 : f32
    %15 = vector.broadcast %cst_14 : f32 to vector<2x8x128xf32>
    %16 = arith.mulf %15, %14 : vector<2x8x128xf32>
    %17 = arith.addf %13, %16 : vector<2x8x128xf32>
    %c0_15 = arith.constant 0 : index
    %c0_16 = arith.constant 0 : index
    %c0_17 = arith.constant 0 : index
    %18 = vector.load %arg5[%c0_15, %c0_16, %c0_17] : memref<2x8x128xf32, #tpu.memory_space<vmem>>, vector<2x8x128xf32>
    %cst_18 = arith.constant -3.000000e+00 : f32
    %19 = vector.broadcast %cst_18 : f32 to vector<2x8x128xf32>
    %20 = arith.mulf %19, %18 : vector<2x8x128xf32>
    %21 = arith.addf %17, %20 : vector<2x8x128xf32>
    %c0_19 = arith.constant 0 : index
    %c0_20 = arith.constant 0 : index
    %c0_21 = arith.constant 0 : index
    %22 = vector.load %arg6[%c0_19, %c0_20, %c0_21] : memref<2x8x128xf32, #tpu.memory_space<vmem>>, vector<2x8x128xf32>
    tpu.vector_store %arg6[%c0_19, %c0_20, %c0_21], %21 {strides = array<i32>} : memref<2x8x128xf32, #tpu.memory_space<vmem>>, vector<2x8x128xf32>,
    return
  }
  func.func @transform_0(%arg0: i32) -> (i32, i32, i32) {
    %c0_i32 = arith.constant 0 : i32
    %c0_i32_0 = arith.constant 0 : i32
    %c0_i32_1 = arith.constant 0 : i32
    return %arg0, %c0_i32, %c0_i32_0 : i32, i32, i32
  }
  func.func @transform_1(%arg0: i32) -> (i32, i32, i32) {
    %c0_i32 = arith.constant 0 : i32
    %c0_i32_0 = arith.constant 0 : i32
    %c0_i32_1 = arith.constant 0 : i32
    return %arg0, %c0_i32, %c0_i32_0 : i32, i32, i32
  }
  func.func @transform_2(%arg0: i32) -> (i32, i32, i32) {
    %c0_i32 = arith.constant 0 : i32
    %c0_i32_0 = arith.constant 0 : i32
    %c0_i32_1 = arith.constant 0 : i32
    return %arg0, %c0_i32, %c0_i32_0 : i32, i32, i32
  }
  func.func @transform_3(%arg0: i32) -> (i32, i32, i32) {
    %c0_i32 = arith.constant 0 : i32
    %c0_i32_0 = arith.constant 0 : i32
    %c0_i32_1 = arith.constant 0 : i32
    return %arg0, %c0_i32, %c0_i32_0 : i32, i32, i32
  }
  func.func @transform_4(%arg0: i32) -> (i32, i32, i32) {
    %c0_i32 = arith.constant 0 : i32
    %c0_i32_0 = arith.constant 0 : i32
    %c0_i32_1 = arith.constant 0 : i32
    return %arg0, %c0_i32, %c0_i32_0 : i32, i32, i32
  }
  func.func @transform_5(%arg0: i32) -> (i32, i32, i32) {
    %c0_i32 = arith.constant 0 : i32
    %c0_i32_0 = arith.constant 0 : i32
    %c0_i32_1 = arith.constant 0 : i32
    return %arg0, %c0_i32, %c0_i32_0 : i32, i32, i32
  }
}

</mosaic_0001>

<bundles_post_ra>
// kernel: cost_fn.1
= control target key start
LH: loop header
LB: loop body
LE: loop exit
PB: predicated region body
PF: predicated region fallthrough
CT: control target
= control target key end

     0   :  { %10 = vsyncpa [#allocation3], 0  ;;  %s450_s0 = inlined_call_operand.vmem [shape: s32[2,8,1], index: 0, kind: input, shape index: {}]   ;;  %s451_s1 = inlined_call_operand.hbm [shape: f32[2,32,128], index: 1, kind: input, shape index: {}]   ;;  %s452_s2 = inlined_call_operand.hbm [shape: f32[2,1,128], index: 2, kind: input, shape index: {}]   ;;  %s453_s3 = inlined_call_operand.vmem [shape: f32[2,8,128], index: 3, kind: input, shape index: {}]   ;;  %s454_s4 = inlined_call_operand.vmem [shape: f32[2,8,128], index: 4, kind: input, shape index: {}]   ;;  %s455_s5 = inlined_call_operand.hbm [shape: f32[2,8,128], index: 5, kind: output, shape index: {}]  }
   0x1   :  { %11 = vsyncpa [#allocation6], 0 }
   0x2   :  { %12 = vsyncpa [#allocation4], 0  ;;  %s377_s18 = smov [#allocation2]  }
   0x3   :  { %s20_s19 = sshll.u32 %s377_s18, 4  ;;  %s21_s19 = int_to_ptr.vmem [resolvable:$true] %s20_s19 }
   0x4   :  { %s319_s20 = scalar_lea.vmem %s21_s19, 1024  ;;  %p324_p1 = scmp.lt.s32.totalorder %s21_s19, %s21_s19 }
   0x5   :  { %p320_p0 = scmp.ne.s32.totalorder %s21_s19, %s319_s20  ;;  %p325_p2 = scmp.lt.s32.totalorder %s319_s20, %s319_s20 }
   0x7   :  { %p326_p3 = por %p325_p2, %p324_p1 }
   0x9   :  { %p327_p4 = pnand %p326_p3, %p320_p0 }
   0xb   :  { %330 = shalt.err (!%p327_p4)
}
   0xc   :  { %s378_s21 = smov 128   ;;  %s379_s22 = smov 8  }
   0xd   :  { %26 = dma.hbm_to_vmem [thread:$0]  %s451_s1, 1024, %s21_s19, [#allocation3], %s378_s21, %s378_s21, %s379_s22  }
   0xe   :  { %s380_s25 = smov [#allocation5]  }
   0xf   :  { %s32_s26 = sshll.u32 %s380_s25, 4  ;;  %s33_s26 = int_to_ptr.vmem [resolvable:$true] %s32_s26 }
  0x10   :  { %s339_s27 = scalar_lea.vmem %s33_s26, 32  ;;  %p344_p6 = scmp.lt.s32.totalorder %s33_s26, %s33_s26 }
  0x11   :  { %p340_p5 = scmp.ne.s32.totalorder %s33_s26, %s339_s27  ;;  %p345_p7 = scmp.lt.s32.totalorder %s339_s27, %s339_s27 }
  0x13   :  { %p346_p8 = por %p345_p7, %p344_p6 }
  0x15   :  { %p347_p9 = pnand %p346_p8, %p340_p5 }
  0x17   :  { %350 = shalt.err (!%p347_p9)
}
  0x18   :  { %s381_s28 = smov 16   ;;  %s382_s29 = smov 1  }
  0x19   :  { %38 = dma.hbm_to_vmem [thread:$0]  %s452_s2, 32, %s33_s26, [#allocation6], %s381_s28, %s381_s28, %s382_s29  }
  0x1a   :  { %371 = dma.done.wait [#allocation3], 1024  }
  0x1b   :  { %372 = vsyncadd [#allocation3], 4294966272 }
  0x1c   :  { %373 = dma.done.wait [#allocation6], 32  }
  0x1d   :  { %374 = vsyncadd [#allocation6], 4294967264  ;;  %v383_v0 = vmov 0   ;;  %v384_v1 = vmov 0.0   ;;  %vm385_vm0 = vmmov 0   ;;  %v51_v2 = vld [vmem:[%s450_s0] sm:$0xff]  ;;  %v49_v12 = vlaneseq }
  0x1e   :  { %310 = vset.pattern.permute.xlu0 %v383_v0  ;;  %278 = vmatprep.subr.mxu0 %v384_v1  ;;  %v66_v3 = vld [vmem:[#allocation2 + $0x18] sm:$0xff]  ;;  %v65_v4 = vld [vmem:[#allocation2 + $0x10] sm:$0xff]  ;;  %v52_v6 = vld [vmem:[%s450_s0 + $0x8] sm:$0xff]  ;;  %vm87_vm1 = vcmask 261120   ;;  %s386_s16 = smov [#allocation7]  }
  0x1f   :  { %289 = vmatprep.subr.mxu1 %v384_v1  ;;  %286 = vmatprep.mubr.msk.f32.mxu0 %vm385_vm0, %v384_v1  ;;  %v70_v5 = vld [vmem:[#allocation2 + $0x38] sm:$0xff]  ;;  %v64_v7 = vld [vmem:[#allocation2 + $0x8] sm:$0xff]  ;;  %v69_v8 = vld [vmem:[#allocation2 + $0x30] sm:$0xff]  ;;  %v50_v13 = vand.u32 127, %v49_v12  ;;  %v78_v18 = vshrl.u32 %v49_v12, 7  ;;  %s253_s17 = sshll.u32 %s386_s16, 4  ;;  %s254_s17 = int_to_ptr.vmem [resolvable:$true] %s253_s17 }
  0x20   :  { %297 = vmatprep.mubr.msk.f32.mxu1 %vm385_vm0, %v384_v1  ;;  %54 = vperm.xlu0 %310, %v51_v2   ;;  %v63_v9 = vld [vmem:[#allocation2] sm:$0xff]  ;;  %v68_v10 = vld [vmem:[#allocation2 + $0x28] sm:$0xff]  ;;  %p356_p11 = scmp.lt.s32.totalorder %s254_s17, %s254_s17 }
  0x21   :  { %279 = vmatpush3.msra.mxu0 %v66_v3  ;;  %290 = vmatpush3.msra.mxu1 %v70_v5  ;;  %v67_v11 = vld [vmem:[#allocation2 + $0x20] sm:$0xff]  ;;  %v79_v21 = vsub.s32 0, %v78_v18  ;;  %v235_v29 = vld [vmem:[%s453_s3 + $0x8] sm:$0xff] }
  0x22   :  { %280 = vmatprep.subr.mxu0 %v384_v1  ;;  %291 = vmatprep.subr.mxu1 %v384_v1  ;;  %v71_v19 = vld [vmem:[#allocation5] sm:$0x1]  ;;  %v72_v22 = vld [vmem:[#allocation5 + $0x1] sm:$0x1]  ;;  %v241_v34 = vld [vmem:[%s454_s4 + $0x8] sm:$0xff]  ;;  %v237_v36 = vmul.f32 0.5, %v235_v29 }
  0x23   :  { %281 = vmatpush3.msra.mxu0 %v65_v4  ;;  %292 = vmatpush3.msra.mxu1 %v69_v8  ;;  %v73_v20 = vmul.f32 -2.0, %v71_v19  ;;  %v234_v23 = vld [vmem:[%s453_s3] sm:$0xff]  ;;  %v74_v25 = vmul.f32 -2.0, %v72_v22  ;;  %v243_v40 = vmul.f32 -3.0, %v241_v34  ;;  %s351_s3 = scalar_lea.vmem %s254_s17, 256 }
  0x24   :  { %282 = vmatprep.subr.mxu0 %v384_v1  ;;  %57 = vperm.xlu0 %310, %v52_v6   ;;  %v240_v26 = vld [vmem:[%s454_s4] sm:$0xff]  ;;  %v236_v27 = vmul.f32 0.5, %v234_v23  ;;  %p352_p10 = scmp.ne.s32.totalorder %s254_s17, %s351_s3  ;;  %p357_p12 = scmp.lt.s32.totalorder %s351_s3, %s351_s3 }
  0x25   :  { %283 = vmatpush3.msra.mxu0 %v64_v7  ;;  %293 = vmatprep.subr.mxu1 %v384_v1  ;;  %v80_v24 = vrot.slane %v73_v20, %v79_v21  ;;  %v242_v31 = vmul.f32 -3.0, %v240_v26  ;;  %v84_v32 = vrot.slane %v74_v25, %v79_v21 }
  0x26   :  { %284 = vmatprep.subr.mxu0 %v384_v1  ;;  %294 = vmatpush3.msra.mxu1 %v68_v10  ;;  %p358_p13 = por %p357_p12, %p356_p11 }
  0x27   :  { %285 = vmatpush3.msra.mxu0 %v63_v9  ;;  %295 = vmatprep.subr.mxu1 %v384_v1 }
  0x28   :  { %296 = vmatpush3.msra.mxu1 %v67_v11  ;;  %p359_p0 = pnand %p358_p13, %p352_p10 }
  0x9b   :  { %v55_v14 = vpop.permute.xlu0 %54 }
  0x9c   :  { %vm59_vm2 = vcmp.eq.s32.totalorder %v50_v13, %v55_v14 }
  0x9d   :  { %v61_v15 = vsel %vm59_vm2, -1.0, %v384_v1 }
  0x9e   :  { %287 = vmatmul.mubr.msk.f32.vlgmr.msra.gmra.mxu0 %vm87_vm1, %v61_v15 }
  0x9f   :  { %v58_v16 = vpop.permute.xlu0 %57 }
  0xa0   :  { %vm60_vm3 = vcmp.eq.s32.totalorder %v50_v13, %v58_v16 }
  0xa1   :  { %v62_v17 = vsel %vm60_vm3, -1.0, %v384_v1 }
  0xa2   :  { %298 = vmatmul.mubr.msk.f32.vlgmr.msra.gmra.mxu1 %vm87_vm1, %v62_v17 }
 0x15e   :  { %v157_v28 = vpop.f32.mrf.mxu0 }
 0x15f   :  { %v158_v30 = vadd.f32 %v157_v28, %v80_v24 }
 0x160   :  { %v288_v33 = vpop.f32.mrf.mxu0 }
 0x161   :  { %v238_v35 = vadd.f32 %v236_v27, %v158_v30 }
 0x162   :  { %v230_v37 = vpop.f32.mrf.mxu1 }
 0x163   :  { %v244_v38 = vadd.f32 %v242_v31, %v238_v35  ;;  %v231_v39 = vadd.f32 %v230_v37, %v84_v32 }
 0x164   :  { %v299_v41 = vpop.f32.mrf.mxu1 }
 0x165   :  { %246 = vst [vmem:[#allocation7] sm:$0xff] %v244_v38  ;;  %v239_v42 = vadd.f32 %v237_v36, %v231_v39 }
 0x167   :  { %v245_v43 = vadd.f32 %v243_v40, %v239_v42 }
 0x169   :  { %247 = vst [vmem:[#allocation7 + $0x8] sm:$0xff] %v245_v43 }
 0x16a   :  { %362 = shalt.err (!%p359_p0)
}
 0x16b   :  { %259 = dma.vmem_to_hbm [thread:$0]  %s254_s17, 256, %s455_s5, [#allocation4], %s378_s21, %s378_s21, %s379_s22  }
 0x16c   :  { %375 = dma.done.wait [#allocation4], 256  }
 0x16d   :  { %376 = vsyncadd [#allocation4], 4294967040 }
 0x16e   :  { %263 = vsyncpa [#allocation3], 1 }
 0x16f   :  { %264 = vsyncpa [#allocation6], 1 }
 0x170   :  { %265 = vsyncpa [#allocation4], 1 }

</bundles_post_ra>
